<compile_context>
chip_gen: v7x
topology: tpu7x:2x2x1
jax: 0.10.0
libtpu: 0.0.40
codegen_flags: <defaults>
</compile_context>

<pallas_src>
import jax
import jax.numpy as jnp
from jax.experimental import pallas as pl
from jax.experimental.pallas import tpu as pltpu


def _round_up(x, m):
    return ((x + m - 1) // m) * m


def _cdiv(a, b):
    return -(-a // b)


def _sublane_min(dtype):
    # minimum second-minor block size by element width (packing minimum)
    return {1: 32, 2: 16, 4: 8}.get(jnp.dtype(dtype).itemsize, 8)


def _inr_kernel(x_ref, w_ref, b_ref, o_ref):
    # x_ref: (tm, K), w_ref: (K, tn) pre-transposed, b_ref: (1, tn) f32
    y = jnp.dot(x_ref[...], w_ref[...], preferred_element_type=jnp.float32)
    y = y + b_ref[...]                                  # f32 bias broadcasts over rows
    o_ref[...] = jnp.maximum(y, 0.0).astype(o_ref.dtype)


def _inr_kernel_smallk(x_ref, w_ref, b_ref, o_ref):
    # VPU broadcast-FMA path for coordinate-style inputs (dim_in < 8): the MXU would
    # pad K to 128/256 and run at ~1-2% utilization.
    x = x_ref[...].astype(jnp.float32)                  # (tm, K), K tiny
    w = w_ref[...].astype(jnp.float32)                  # (K, tn)
    acc = jnp.zeros((x.shape[0], w.shape[1]), jnp.float32) + b_ref[...]
    for k in range(x.shape[1]):                         # static unroll over tiny K
        acc = acc + x[:, k:k + 1] * w[k:k + 1, :]
    o_ref[...] = jnp.maximum(acc, 0.0).astype(o_ref.dtype)


def inr_layer_forward(x, weight, bias, scale=1.0, shift=0.0, *,
                      tm=512, tn=512, vmem_budget_bytes=None):
    """INRLayer.forward: ReLU(scale * Linear(x) + shift).

    x:      [batch, ..., dim_in]   (channel-last, nn.Linear convention)
    weight: [dim_out, dim_in]      (PyTorch nn.Linear convention)
    bias:   [dim_out] or None
    scale, shift: scalars (the only case the wrapper-side fold is valid for).
    """
    assert jnp.ndim(scale) == 0 and jnp.ndim(shift) == 0, \
        "only scalar scale/shift modulation is folded into W/b"

    dim_out, dim_in = weight.shape
    lead = x.shape[:-1]
    xf = x.reshape(-1, dim_in)                 # collapsing leading dims: free in XLA
    n_rows = xf.shape[0]

    # ---- fold scalar modulation + pre-transpose W once (O(dim_in*dim_out)) ------
    w_eff = (weight * scale).T.astype(x.dtype)            # [dim_in, dim_out]
    if bias is None:
        b_eff = jnp.full((dim_out,), shift, dtype=jnp.float32)
    else:
        b_eff = bias.astype(jnp.float32) * scale + shift   # bias stays f32
    b_eff = b_eff.reshape(1, dim_out)

    # ---- VMEM budget / compiler limit -------------------------------------------
    if vmem_budget_bytes is None:
        try:
            cap = int(pltpu.get_tpu_info().vmem_capacity_bytes)
        except Exception:
            cap = 64 * 1024 * 1024             # conservative: assume v7x-sized VMEM
        # ~24 MiB working-set budget on 64-MiB parts (v7x), ~48 MiB on 128-MiB parts.
        vmem_budget_bytes = (24 << 20) if cap <= (64 << 20) else (48 << 20)
    else:
        cap = max(64 * 1024 * 1024, 2 * int(vmem_budget_bytes))

    el = jnp.dtype(x.dtype).itemsize
    sub = _sublane_min(x.dtype)

    def _vmem_bytes(m, n):
        # double-buffered x / W / bias / out tiles + f32 matmul intermediate
        return 2 * (el * m * dim_in + el * dim_in * n + 4 * n + el * m * n) + 4 * m * n

    def _fits(m, n):
        return _vmem_bytes(m, n) <= vmem_budget_bytes

    # ---- tile selection ----------------------------------------------------------
    tm = _round_up(max(tm, sub), sub)
    if n_rows <= sub:
        tm_eff = n_rows                                   # full-dim block is always legal
    else:
        tm_eff = min(tm, _round_up(n_rows, sub))

    # Prefer the full output width (W resident for the whole kernel, lane-dense
    # unmasked stores); shrink the row tile first if over budget.
    tn_eff = dim_out
    while not _fits(tm_eff, tn_eff) and tm_eff > 256:
        tm_eff = max(256, _round_up(tm_eff // 2, sub))

    if not _fits(tm_eff, tn_eff):
        # Tile output columns: multiple of 128 required when < dim_out; floor at 256
        # to keep the 2x256x256 MXU (v6e/v7x) fully fed, 128 only as a last resort.
        tn_eff = min(_round_up(dim_out, 128), max(256, (tn // 128) * 128))
        while not _fits(tm_eff, tn_eff) and tn_eff > 256:
            tn_eff = max(256, _round_up(tn_eff // 2, 128))
        while not _fits(tm_eff, tn_eff) and tm_eff > sub:
            tm_eff = max(sub, _round_up(tm_eff // 2, sub))
        if not _fits(tm_eff, tn_eff) and tn_eff > 128:
            tn_eff = 128

    # Ensure the rows grid axis has >= 2 blocks so both v7x TensorCores get work
    # (cost on single-TC parts: one extra ~0.35 us grid step).
    if n_rows > sub and _cdiv(n_rows, tm_eff) == 1:
        tm_eff = max(sub, _round_up(_cdiv(n_rows, 2), sub))

    ws = _vmem_bytes(tm_eff, tn_eff)
    vmem_limit = int(min(cap - (16 << 20), max(32 << 20, 2 * ws)))
    vmem_limit = max(vmem_limit, ws + (4 << 20))

    grid = (_cdiv(n_rows, tm_eff), _cdiv(dim_out, tn_eff))
    kernel = _inr_kernel_smallk if dim_in < 8 else _inr_kernel

    cost = pl.CostEstimate(
        flops=2 * n_rows * dim_in * dim_out,
        transcendentals=0,
        bytes_accessed=(el * n_rows * dim_in + el * dim_in * dim_out
                        + 4 * dim_out + el * n_rows * dim_out),
    )

    out = pl.pallas_call(
        kernel,
        out_shape=jax.ShapeDtypeStruct((n_rows, dim_out), x.dtype),
        grid_spec=pltpu.PrefetchScalarGridSpec(
            num_scalar_prefetch=0,
            grid=grid,
            in_specs=[
                pl.BlockSpec((tm_eff, dim_in), lambda i, j: (i, 0)),   # x row tile
                pl.BlockSpec((dim_in, tn_eff), lambda i, j: (0, j)),   # W^T col tile
                pl.BlockSpec((1, tn_eff), lambda i, j: (0, j)),        # fused f32 bias
            ],
            out_specs=pl.BlockSpec((tm_eff, tn_eff), lambda i, j: (i, j)),
        ),
        compiler_params=pltpu.CompilerParams(
            dimension_semantics=("parallel", "parallel"),
            vmem_limit_bytes=vmem_limit,
        ),
        cost_estimate=cost,
    )(xf, w_eff, b_eff)

    return out.reshape(*lead, dim_out)


# TODO(synk): forward_lowrank_gate (per-sample sigmoid(U V / sqrt(r)) weight gating) not
# implemented here; only the primary forward() hot path is kernelized.
# TODO(synk): per-feature / per-sample scale & shift (FiLM-style) cannot be folded in the
# wrapper and would need an in-kernel epilogue; only scalar modulation is supported.


if __name__ == "__main__":
    key = jax.random.PRNGKey(0)
    kx, kw, kb, kx2, kw2, kb2 = jax.random.split(key, 6)

    # ---- hidden INR layer (MXU path) ----
    batch, seq, dim_in, dim_out = 2, 8, 32, 64
    bound = 1.0 / (dim_in ** 0.5)
    weight = jax.random.uniform(kw, (dim_out, dim_in), jnp.float32, -bound, bound)
    bias = jax.random.uniform(kb, (dim_out,), jnp.float32, -bound, bound)
    x = jax.random.normal(kx, (batch, seq, dim_in), dtype=jnp.float32)
    scale, shift = 1.3, -0.1

    out = jax.block_until_ready(inr_layer_forward(x, weight, bias, scale, shift))
    ref = jnp.maximum(scale * (x @ weight.T + bias) + shift, 0.0)
    assert out.shape == (batch, seq, dim_out)
    assert jnp.allclose(out, ref, atol=1e-5, rtol=1e-5), "mismatch vs reference (MXU path)"

    # ---- first INR layer with coordinate inputs (VPU broadcast-FMA path) ----
    c_in, c_out = 3, 64
    bound2 = 1.0 / (c_in ** 0.5)
    weight2 = jax.random.uniform(kw2, (c_out, c_in), jnp.float32, -bound2, bound2)
    bias2 = jax.random.uniform(kb2, (c_out,), jnp.float32, -bound2, bound2)
    coords = jax.random.normal(kx2, (batch, 16, c_in), dtype=jnp.float32)

    out2 = jax.block_until_ready(inr_layer_forward(coords, weight2, bias2, 0.9, 0.05))
    ref2 = jnp.maximum(0.9 * (coords @ weight2.T + bias2) + 0.05, 0.0)
    assert out2.shape == (batch, 16, c_out)
    assert jnp.allclose(out2, ref2, atol=1e-5, rtol=1e-5), "mismatch vs reference (VPU path)"

    print("KERNEL_OK")
</pallas_src>

<mosaic_0001>
module attributes {stable_mosaic.version = 11 : i64} {
  func.func @_inr_kernel(%arg0: i32, %arg1: i32, %arg2: memref<8x32xf32, #tpu.memory_space<vmem>>, %arg3: memref<32x64xf32, #tpu.memory_space<vmem>>, %arg4: memref<1x64xf32, #tpu.memory_space<vmem>>, %arg5: memref<8x64xf32, #tpu.memory_space<vmem>>) attributes {dimension_semantics = [#tpu.dimension_semantics<parallel>, #tpu.dimension_semantics<parallel>], iteration_bounds = array<i64: 2, 1>, scalar_prefetch = 0 : i64, scratch_operands = 0 : i64, tpu.core_type = #tpu.core_type<tc>, window_params = [{transform_indices = @transform_0, window_bounds = array<i64: 8, 32>}, {transform_indices = @transform_1, window_bounds = array<i64: 32, 64>}, {transform_indices = @transform_2, window_bounds = array<i64: 1, 64>}, {transform_indices = @transform_3, window_bounds = array<i64: 8, 64>}]} {
    %c0 = arith.constant 0 : index
    %c0_0 = arith.constant 0 : index
    %0 = vector.load %arg2[%c0, %c0_0] : memref<8x32xf32, #tpu.memory_space<vmem>>, vector<8x32xf32>
    %c0_1 = arith.constant 0 : index
    %c0_2 = arith.constant 0 : index
    %1 = vector.load %arg3[%c0_1, %c0_2] : memref<32x64xf32, #tpu.memory_space<vmem>>, vector<32x64xf32>
    %cst = arith.constant dense<0.000000e+00> : vector<8x64xf32>
    %2 = tpu.matmul %0, %1, %cst {dimension_numbers = #tpu.dot_dimension_numbers<[1], [0], [0], [1], [0, 0, 1, 1], [], []>} : vector<8x32xf32>, vector<32x64xf32>, vector<8x64xf32> -> vector<8x64xf32>
    %c0_3 = arith.constant 0 : index
    %c0_4 = arith.constant 0 : index
    %3 = vector.load %arg4[%c0_3, %c0_4] : memref<1x64xf32, #tpu.memory_space<vmem>>, vector<1x64xf32>
    %4 = vector.broadcast %3 : vector<1x64xf32> to vector<8x64xf32>
    %5 = arith.addf %2, %4 : vector<8x64xf32>
    %cst_5 = arith.constant 0.000000e+00 : f32
    %6 = vector.broadcast %cst_5 : f32 to vector<8x64xf32>
    %7 = arith.maximumf %5, %6 : vector<8x64xf32>
    %c0_6 = arith.constant 0 : index
    %c0_7 = arith.constant 0 : index
    %8 = vector.load %arg5[%c0_6, %c0_7] : memref<8x64xf32, #tpu.memory_space<vmem>>, vector<8x64xf32>
    tpu.vector_store %arg5[%c0_6, %c0_7], %7 {strides = array<i32>} : memref<8x64xf32, #tpu.memory_space<vmem>>, vector<8x64xf32>,
    return
  }
  func.func @transform_0(%arg0: i32, %arg1: i32) -> (i32, i32) {
    %c0_i32 = arith.constant 0 : i32
    %c0_i32_0 = arith.constant 0 : i32
    return %arg0, %c0_i32 : i32, i32
  }
  func.func @transform_1(%arg0: i32, %arg1: i32) -> (i32, i32) {
    %c0_i32 = arith.constant 0 : i32
    %c0_i32_0 = arith.constant 0 : i32
    return %c0_i32, %arg1 : i32, i32
  }
  func.func @transform_2(%arg0: i32, %arg1: i32) -> (i32, i32) {
    %c0_i32 = arith.constant 0 : i32
    %c0_i32_0 = arith.constant 0 : i32
    return %c0_i32, %arg1 : i32, i32
  }
  func.func @transform_3(%arg0: i32, %arg1: i32) -> (i32, i32) {
    %c0_i32 = arith.constant 0 : i32
    return %arg0, %arg1 : i32, i32
  }
}

</mosaic_0001>

<bundles_post_ra>
// kernel: tpu_custom_call.1
= control target key start
LH: loop header
LB: loop body
LE: loop exit
PB: predicated region body
PF: predicated region fallthrough
CT: control target
= control target key end

     0   :  { %8 = vsyncpa [#allocation3], 0  ;;  %s952_s0 = inlined_call_operand.hbm [shape: f32[16,32], index: 0, kind: input, shape index: {}]   ;;  %s953_s1 = inlined_call_operand.hbm [shape: f32[32,64], index: 1, kind: input, shape index: {}]   ;;  %s954_s2 = inlined_call_operand.vmem [shape: f32[1,64], index: 2, kind: input, shape index: {}]   ;;  %s955_s3 = inlined_call_operand.hbm [shape: f32[16,64], index: 3, kind: output, shape index: {}]  }
   0x1   :  { %10 = vsyncpa [#allocation3 + $0x1], 0 }
   0x2   :  { %11 = vsyncpa [#allocation6], 0 }
   0x3   :  { %12 = vsyncpa [#allocation4], 0 }
   0x4   :  { %14 = vsyncpa [#allocation4 + $0x1], 0  ;;  %s735_s12 = smov 0   ;;  %s737_s13 = smov 0  }
   0x5   :  { %s739_s14 = smov 0   ;;  %s741_s15 = smov 0  }
   0x6   :  { %s743_s16 = smov 0   ;;  %s745_s17 = smov 0  }
   0x7 LB: > { %s443_s18 = sadd.s32 4294967295, %s705_s17   ;;  %s444_s19 = sadd.s32 4294967294, %s705_s17   ;;  %s705_s17 = sphi %s745_s17, %s20_s17   ;;  %s701_s16 = sphi %s743_s16, %s979_s16   ;;  %s697_s15 = sphi %s741_s15, %s978_s15   ;;  %s693_s14 = sphi %s739_s14, %s977_s14   ;;  %s689_s13 = sphi %s737_s13, %s976_s13   ;;  %s685_s12 = sphi %s735_s12, %s975_s12  }
   0x8   : > { %p52_p0 = scmp.ne.s32.totalorder %s689_s13, %s685_s12  ;;  %p769_p1 = scmp.eq.s32.totalorder %s443_s18, 0 }
   0x9   : > { %p773_p2 = scmp.eq.s32.totalorder %s443_s18, 1  ;;  %p136_p3 = scmp.eq.s32.totalorder %s444_s19, 1 }
   0xa   : > { %s960_s20 = scalar_select %p769_p1, 1, 0 }
   0xb   : > { %s961_s21 = scalar_select %p773_p2, 1, 0 }
   0xc   : > { %p779_p4 = por %p769_p1, %p52_p0  ;;  %p445_p5 = scmp.ge.s32.totalorder %s705_s17, 1 }
   0xd   : > { %p784_p6 = por %p136_p3, %p52_p0  ;;  %p143_p7 = scmp.lt.s32.totalorder %s705_s17, 3 }
   0xe   : > { %s962_s22 = scalar_select %p779_p4, 1, 0 }
   0xf   : > { %s963_s23 = scalar_select %p784_p6, 1, 0 }
  0x10   : > { %p789_p8 = pnand %p445_p5, %p143_p7  ;;  %s707_s25 = smov [#allocation5]  }
  0x11   : > { %s157_s26 = sshll.u32 %s707_s25, 4  ;;  %s32_s28 = sadd.s32 1, %s701_s16  ;;  %s158_s26 = int_to_ptr.vmem [resolvable:$true] %s157_s26 }
  0x12   : > { %s964_s24 = scalar_select %p789_p8, 1, 0 }
  0x13   : > { %p491_p9 = pneg %p789_p8  ;;  %s561_s4 = scalar_lea.hbm %s953_s1, 512 }
  0x14   : > { %p562_p12 = scmp.ne.s32.totalorder %s953_s1, %s561_s4  ;;  %p568_p5 = scmp.lt.u32.totalorder %s561_s4, %s953_s1 }
  0x15   : > { %p798_p11 = pnand %p491_p9, %p769_p1 }
  0x17   : > { %p563_p13 = pneg %p798_p11 }
  0x19   : > { %p564_p0 = pnand %p563_p13, %p562_p12 }
  0x1b   : > { %p565_p3 = pneg %p564_p0 }
  0x1d   : > { %p570_p7 = pnand %p568_p5, %p565_p3 }
  0x1f   : > { %573 = shalt.err (!%p570_p7)
}
  0x20   : > { %s574_s9 = scalar_lea.vmem %s158_s26, 512  ;;  %p582_p1 = scmp.lt.s32.totalorder %s158_s26, %s158_s26 }
  0x21   : > { %p575_p9 = scmp.ne.s32.totalorder %s158_s26, %s574_s9  ;;  %p583_p4 = scmp.lt.s32.totalorder %s574_s9, %s574_s9 }
  0x23   : > { %p577_p10 = pnand %p575_p9, %p563_p13  ;;  %p584_p8 = por %p583_p4, %p582_p1 }
  0x25   : > { %p578_p6 = pneg %p577_p10 }
  0x27   : > { %p585_p2 = pnand %p584_p8, %p578_p6 }
  0x29   : > { %588 = shalt.err (!%p585_p2)
}
  0x2a   : > { %s708_s10 = smov 128   ;;  %s709_s11 = smov 8  }
  0x2b   : > { %494 = dma.hbm_to_vmem [thread:$0]  (!%p798_p11), %s953_s1, 512, %s158_s26, [#allocation6], %s708_s10, %s708_s10, %s709_s11  }
  0x2c   : > { %p34_p1 = scmp.ge.s32.totalorder %s32_s28, 2  ;;  %s39_s25 = sadd.s32 1, %s693_s14 }
  0x2d   : > { %p46_p2 = scmp.ne.s32.totalorder %s693_s14, %s689_s13  ;;  %p47_p4 = scmp.eq.s32.totalorder %s705_s17, 0 }
  0x2e   : > { %s981_s28 = smov (%p34_p1, %s32_s28), 0  ;;  %p967_p8 = scmp.ne.s32.totalorder %s961_s21, 0 }
  0x2f   : > { %p825_p6 = por %p47_p4, %p46_p2  ;;  %s36_s27 = ssub.s32 %s701_s16, %s981_s28 }
  0x30   : > { %p831_p10 = por %p967_p8, %p46_p2  ;;  %p504_p12 = scmp.lt.s32.totalorder %s705_s17, 2 }
  0x31   : > { %p37_p11 = scmp.eq.s32.totalorder %s36_s27, 0  ;;  %s177_s26 = sand.u32 1, %s693_s14  }
  0x32   : > { %s449_s4 = sshll.u32 %s177_s26, 3  ;;  %s450_s6 = sshll.u32 %s701_s16, 7 }
  0x33   : > { %s840_s5 = scalar_select %p37_p11, %s693_s14, %s39_s25  }
  0x34   : > { %s846_s9 = scalar_lea.hbm %s952_s0, %s450_s6  ;;  %s181_s21 = scalar_lea.vmem [#allocation2], %s449_s4 }
  0x35   : > { %s188_s10 = sshll.u32 %s181_s21, 4  ;;  %p852_p13 = pnand %p504_p12, %p825_p6  ;;  %s848_s10 = int_to_ptr.vmem [resolvable:$true] %s188_s10 }
  0x36   : > { %s178_s18 = scalar_lea.sflag [#allocation3], %s177_s26  ;;  %s589_s19 = scalar_lea.hbm %s846_s9, 128 }
  0x37   : > { %p590_p0 = scmp.ne.s32.totalorder %s846_s9, %s589_s19  ;;  %p591_p3 = pneg %p852_p13 }
  0x38   : > { %s594_s4 = scalar_lea.hbm %s952_s0, 256  ;;  %p595_p9 = scmp.lt.u32.totalorder %s846_s9, %s952_s0 }
  0x39   : > { %p592_p5 = pnand %p591_p3, %p590_p0  ;;  %p596_p1 = scmp.lt.u32.totalorder %s594_s4, %s589_s19 }
  0x3a   : > { %p598_p4 = scmp.lt.u32.totalorder %s589_s19, %s846_s9 }
  0x3b   : > { %p593_p7 = pneg %p592_p5  ;;  %p597_p2 = por %p596_p1, %p595_p9 }
  0x3d   : > { %p599_p6 = por %p598_p4, %p597_p2 }
  0x3f   : > { %p600_p8 = pnand %p599_p6, %p593_p7 }
  0x41   : > { %603 = shalt.err (!%p600_p8)
}
  0x42   : > { %s604_s26 = scalar_lea.vmem %s848_s10, 128  ;;  %s710_s7 = smov [#allocation2]  }
  0x43   : > { %p605_p12 = scmp.ne.s32.totalorder %s848_s10, %s604_s26  ;;  %s609_s8 = sshll.u32 %s710_s7, 4  ;;  %s610_s8 = int_to_ptr.vmem [resolvable:$false] %s609_s8 }
  0x44   : > { %s611_s21 = scalar_lea.vmem %s610_s8, 256  ;;  %p612_p5 = scmp.lt.s32.totalorder %s848_s10, %s610_s8 }
  0x45   : > { %p607_p11 = pnand %p605_p12, %p591_p3  ;;  %p613_p9 = scmp.lt.s32.totalorder %s611_s21, %s604_s26 }
  0x47   : > { %p608_p0 = pneg %p607_p11  ;;  %p614_p1 = por %p613_p9, %p612_p5 }
  0x49   : > { %p615_p2 = pnand %p614_p1, %p608_p0 }
  0x4b   : > { %618 = shalt.err (!%p615_p2)
}
  0x4c   : > { %498 = dma.hbm_to_vmem [thread:$0]  (!%p852_p13), %s846_s9, 128, %s848_s10, %s178_s18  }
  0x4d   : > { %p970_p7 = scmp.ne.s32.totalorder %s964_s24, 0 }
  0x4e   : > { %s884_s19 = sand.u32 (!%p970_p7), 1, %s689_s13   ;;  %p971_p3 = scmp.ne.s32.totalorder (!%p970_p7), %s962_s22, 0 }
  0x4f   : > { %197 = sbr.rel (%p970_p7) target bundleno = 331 (0x14b), region = 32  ;;  %s452_s25 = sshll.u32 (!%p970_p7), %s884_s19, 3 }
  0x50   : > { %s200_s27 = scalar_lea.sflag (!%p970_p7), [#allocation3], %s884_s19  ;;  %s203_s4 = scalar_lea.vmem (!%p970_p7), [#allocation2], %s452_s25 }
  0x56   : > { %672 = dma.done.wait (%p971_p3), %s200_s27, 128  }
  0x57   : > { %674 = vsyncadd (%p971_p3), %s200_s27, 4294967168  ;;  %p972_p4 = scmp.ne.s32.totalorder %s960_s20, 0 }
  0x59   : > { %676 = dma.done.wait (%p972_p4), [#allocation6], 512  }
  0x5a   : > { %678 = vsyncadd (%p972_p4), [#allocation6], 4294966784  ;;  %v711_v0 = vmov 0.0|0.0   ;;  %vm712_vm0 = vmmov 0   ;;  %v713_v1 = vmov 0.0   ;;  %v237_v2 = vld [vmem:[#allocation5] sm:$0xff] }
  0x5b   : > { %477 = vmatprep.subr.bf16.mxu0 %v711_v0  ;;  %474 = vmatprep.mubr.msk.f32.mxu0 %vm712_vm0, %v713_v1  ;;  %v238_v3 = vld [vmem:[#allocation5 + $0x8] sm:$0xff]  ;;  %v239_v4 = vld [vmem:[#allocation5 + $0x10] sm:$0xff]  ;;  %v240_v6 = vld [vmem:[#allocation5 + $0x18] sm:$0xff]  ;;  %vm248_vm1 = vcmask 261120   ;;  %s458_s24 = sshll.u32 %s697_s15, 7  ;;  %s232_s9 = scalar_lea.vmem [#allocation7], %s452_s25 }
  0x5c   : > { %v478_v5 = vpack.c.bf16 %v238_v3, %v237_v2  ;;  %v481_v7 = vpack.c.bf16 %v240_v6, %v239_v4  ;;  %v236_v8 = vld [vmem:[%s203_s4] sm:$0xff]  ;;  %s340_s10 = sshll.u32 %s232_s9, 4  ;;  %vm323_vm2 = vcmask 523264   ;;  %s903_s29 = scalar_lea.hbm %s955_s3, %s458_s24  ;;  %s905_s10 = int_to_ptr.vmem [resolvable:$true] %s340_s10 }
  0x5d   : > { %v455_v9 = vld [vmem:[%s954_s2] ss:$0 sm:$0xff]  ;;  %s326_s6 = scalar_lea.sflag [#allocation4], %s884_s19  ;;  %s619_s26 = scalar_lea.vmem %s905_s10, 128 }
  0x5e   : > { %479 = vmatpush3.bf16.msra.mxu0 %v478_v5  ;;  %p620_p13 = scmp.ne.s32.totalorder %s905_s10, %s619_s26  ;;  %s714_s15 = smov [#allocation7]  }
  0x5f   : > { %480 = vmatprep.subr.bf16.mxu0 %v711_v0  ;;  %s623_s7 = sshll.u32 %s714_s15, 4  ;;  %s624_s7 = int_to_ptr.vmem [resolvable:$false] %s623_s7 }
  0x60   : > { %p621_p6 = pnand %p620_p13, %p831_p10  ;;  %s625_s8 = scalar_lea.vmem %s624_s7, 256 }
  0x61   : > { %p626_p12 = scmp.lt.s32.totalorder %s905_s10, %s624_s7  ;;  %p627_p11 = scmp.lt.s32.totalorder %s625_s8, %s619_s26 }
  0x62   : > { %482 = vmatpush3.bf16.msra.mxu0 %v481_v7  ;;  %p622_p8 = pneg %p621_p6 }
  0x63   : > { %p628_p0 = por %p627_p11, %p626_p12 }
  0x65   : > { %475 = vmatmul.mubr.msk.f32.vlgmr.msra.gmra.mrb[0].mxu0 %vm248_vm1, %v236_v8  ;;  %p629_p5 = pnand %p628_p0, %p622_p8 }
 0x138   : > { %v318_v10 = vpop.f32.mrb[0].mxu0 }
 0x139   : > { %v319_v11 = vadd.f32 %v455_v9, %v318_v10  ;;  %v476_v12 = vpop.f32.mrb[1].mxu0 }
 0x13b   : > { %v322_v13 = vmax.f32 %v319_v11, 0.0 }
 0x13d   : > { %324 = vst.msk [vmem:[%s232_s9] sm:$0xff] %vm323_vm2, %v322_v13 }
 0x13e   : > { %632 = shalt.err (!%p629_p5)
}
 0x13f   : > { %s633_s21 = scalar_lea.hbm %s903_s29, 128  ;;  %s637_s27 = scalar_lea.hbm %s955_s3, 256 }
 0x140   : > { %p634_p9 = scmp.ne.s32.totalorder %s903_s29, %s633_s21  ;;  %p638_p7 = scmp.lt.u32.totalorder %s903_s29, %s955_s3 }
 0x141   : > { %p639_p3 = scmp.lt.u32.totalorder %s637_s27, %s633_s21  ;;  %p641_p13 = scmp.lt.u32.totalorder %s633_s21, %s903_s29 }
 0x142   : > { %p635_p1 = pnand %p634_p9, %p831_p10 }
 0x143   : > { %p640_p4 = por %p639_p3, %p638_p7 }
 0x144   : > { %p636_p2 = pneg %p635_p1 }
 0x145   : > { %p642_p6 = por %p641_p13, %p640_p4 }
 0x147   : > { %p643_p8 = pnand %p642_p6, %p636_p2 }
 0x149   : > { %646 = shalt.err (!%p643_p8)
}
 0x14a   : > { %489 = dma.vmem_to_hbm [thread:$0]  (%p831_p10), %s905_s10, 128, %s903_s29, %s326_s6  }
 0x14b PF: > { %s352_s22 = sand.u32 1, %s685_s12   ;;  %p973_p12 = scmp.ne.s32.totalorder %s963_s23, 0 }
 0x14c   : > { %p974_p11 = scmp.ge.s32.totalorder %s705_s17, 2  ;;  %s353_s24 = scalar_lea.sflag [#allocation4], %s352_s22 }
 0x14e   : > { %p500_p0 = pnand %p974_p11, %p973_p12 }
 0x150   : > { %680 = dma.done.wait (!%p500_p0), %s353_s24, 128  }
 0x151   : > { %682 = vsyncadd (!%p500_p0), %s353_s24, 4294967168  ;;  %s20_s17 = sadd.s32 1, %s705_s17   ;;  %s975_s12 = smov %s689_s13 }
 0x152   : > { %p17_p5 = scmp.ge.s32.totalorder %s20_s17, 4   ;;  %s976_s13 = smov %s693_s14 }
 0x153   : > { %s977_s14 = smov %s840_s5  ;;  %s978_s15 = smov %s701_s16 }
 0x154   : > { %s979_s16 = smov %s981_s28  ;;  %19 = sbr.rel (!%p17_p5) target bundleno = 7 (0x7), region = 85 }
 0x15b   :  { %358 = vsyncpa [#allocation3], 1 }
 0x15c   :  { %360 = vsyncpa [#allocation3 + $0x1], 1 }
 0x15d   :  { %361 = vsyncpa [#allocation6], 1 }
 0x15e   :  { %362 = vsyncpa [#allocation4], 1 }
 0x15f   :  { %364 = vsyncpa [#allocation4 + $0x1], 1 }

</bundles_post_ra>
